<compile_context>
chip_gen: v5e
topology: v5e:2x2
jax: 0.10.0
libtpu: 0.0.40
codegen_flags: <defaults>
</compile_context>

<pallas_src>
import jax
import jax.numpy as jnp
from jax import lax
from jax.experimental import pallas as pl
from jax.experimental.pallas import tpu as pltpu

EPS = 1e-8


# ----------------------------------------------------------------------------
# Kernels
# ----------------------------------------------------------------------------
def _sigmoid_kernel(phi_ref, out_ref):
    """phi_prob = sigmoid(phi), one (K, D, T_tile) tile."""
    out_ref[...] = jax.nn.sigmoid(phi_ref[...])


def _aladynoulli_main_kernel(lam_ref, phiprob_ref, et_ref, pi_ref, theta_ref):
    """One (T_tile, N_tile) tile of the forward pass.

    lam_ref     : (Nt, K, Tt) f32
    phiprob_ref : (K, D, Tt)  f32   (already sigmoid'd)
    et_ref      : (Nt, D)     i32
    pi_ref      : (Nt, D, Tt) f32
    theta_ref   : (Nt, K, Tt) f32
    """
    lam = lam_ref[...]                       # (Nt, K, Tt)
    phi_prob = phiprob_ref[...]              # (K, D, Tt)
    et = et_ref[...]                         # (Nt, D)

    nt, K, tt = lam.shape

    # softmax over the topic axis K (axis 1; T stays on lanes)
    m = jnp.max(lam, axis=1, keepdims=True)
    e = jnp.exp(lam - m)
    theta = e / jnp.sum(e, axis=1, keepdims=True)            # (Nt, K, Tt)

    # K-step VPU broadcast-FMA reduction: pi[n,d,t] = sum_k theta[n,k,t]*phi[k,d,t]
    acc = theta[:, 0, :][:, None, :] * phi_prob[0][None, :, :]        # (Nt, D, Tt)
    for k in range(1, K):
        acc = acc + theta[:, k, :][:, None, :] * phi_prob[k][None, :, :]

    # non-recurrence mask from the grid position (keep t <= event_times[n, d])
    t_start = pl.program_id(0) * tt
    t_idx = t_start + lax.broadcasted_iota(jnp.int32, (1, 1, tt), 2)   # (1,1,Tt)
    keep = t_idx <= et[:, :, None]                                     # (Nt, D, Tt)

    # clamp AFTER masking (masked entries become EPS, matching PyTorch)
    pi_ref[...] = jnp.clip(jnp.where(keep, acc, 0.0), EPS, 1.0 - EPS)
    theta_ref[...] = theta


# ----------------------------------------------------------------------------
# Tiling helpers
# ----------------------------------------------------------------------------
def _pick_tile(total, cap, multiple):
    """Largest divisor of `total` that is <= cap and a multiple of `multiple`;
    falls back to `total` (full dim, always layout-legal)."""
    if total <= cap:
        return total
    for d in range(cap, 0, -1):
        if total % d == 0 and d % multiple == 0:
            return d
    return total


def _candidate_n_tiles(N):
    """Divisors of N that are multiples of 8, descending, plus full N."""
    cands = [d for d in range(N, 0, -1) if N % d == 0 and d % 8 == 0]
    if N not in cands:
        cands = [N] + cands
    return cands


# ----------------------------------------------------------------------------
# Wrapper
# ----------------------------------------------------------------------------
def aladynoulli_forward(lambda_, phi, event_times):
    """lambda_: (N, K, T) f32, phi: (K, D, T) f32, event_times: (N, D) int.

    Returns (pi, theta, phi_prob) in the PyTorch layouts:
      pi (N, D, T), theta (N, K, T), phi_prob (K, D, T).
    """
    N, K, T = lambda_.shape
    Kp, D, Tp = phi.shape
    assert Kp == K and Tp == T

    lam = lambda_.astype(jnp.float32)
    phi = phi.astype(jnp.float32)
    et = event_times.astype(jnp.int32)

    # --- tile selection -----------------------------------------------------
    # T is the lane axis: T_tile must be a multiple of 128 or the full T.
    t_tile = _pick_tile(T, 512, 128)

    # Per-grid-step VMEM footprint of the main kernel (one buffer set), bytes.
    def tile_bytes(nt):
        return 4 * (2 * nt * K * t_tile      # lam + theta
                    + K * D * t_tile         # phi_prob (input)
                    + nt * D * t_tile        # pi
                    + nt * D)                # event_times

    # Budget sized for v7x (64 MiB physical, 32 MiB scoped default):
    # keep double-buffered footprint <= ~24 MiB.
    budget = 24 * 1024 * 1024
    n_tile = N
    for cand in _candidate_n_tiles(N):
        n_tile = cand
        if 2 * tile_bytes(cand) <= budget:
            break

    vmem_needed = 2 * tile_bytes(n_tile) + (1 << 20)
    vmem_limit = int(min(64 * 1024 * 1024, max(32 * 1024 * 1024, vmem_needed)))

    # --- stage 1: phi_prob = sigmoid(phi), computed exactly once -------------
    phi_prob = pl.pallas_call(
        _sigmoid_kernel,
        out_shape=jax.ShapeDtypeStruct((K, D, T), jnp.float32),
        grid=(T // t_tile,),
        in_specs=[pl.BlockSpec((K, D, t_tile), lambda t: (0, 0, t))],
        out_specs=pl.BlockSpec((K, D, t_tile), lambda t: (0, 0, t)),
        compiler_params=pltpu.CompilerParams(
            dimension_semantics=("parallel",)),
    )(phi)

    # --- stage 2: theta / pi over a (T_tiles, N_tiles) grid -------------------
    # N innermost so the phi_prob input block index is constant across the
    # inner sweep (no re-DMA); only the small event_times block re-fetches.
    grid = (T // t_tile, N // n_tile)

    pi, theta = pl.pallas_call(
        _aladynoulli_main_kernel,
        out_shape=(
            jax.ShapeDtypeStruct((N, D, T), jnp.float32),   # pi
            jax.ShapeDtypeStruct((N, K, T), jnp.float32),   # theta
        ),
        grid=grid,
        in_specs=[
            pl.BlockSpec((n_tile, K, t_tile), lambda t, n: (n, 0, t)),
            pl.BlockSpec((K, D, t_tile), lambda t, n: (0, 0, t)),
            pl.BlockSpec((n_tile, D), lambda t, n: (n, 0)),
        ],
        out_specs=(
            pl.BlockSpec((n_tile, D, t_tile), lambda t, n: (n, 0, t)),
            pl.BlockSpec((n_tile, K, t_tile), lambda t, n: (n, 0, t)),
        ),
        compiler_params=pltpu.CompilerParams(
            dimension_semantics=("parallel", "parallel"),
            vmem_limit_bytes=vmem_limit),
    )(lam, phi_prob, et)

    return pi, theta, phi_prob


# ----------------------------------------------------------------------------
# Pure-JAX reference (mirrors the PyTorch module exactly)
# ----------------------------------------------------------------------------
def _reference_forward(lambda_, phi, event_times):
    N, K, T = lambda_.shape
    theta = jax.nn.softmax(lambda_, axis=1)                       # (N, K, T)
    phi_prob = jax.nn.sigmoid(phi)                                # (K, D, T)
    pi = jnp.einsum('nkt,kdt->ndt', theta, phi_prob)              # (N, D, T)
    t_idx = jnp.arange(T)[None, None, :]
    mask = (t_idx <= event_times[:, :, None]).astype(pi.dtype)
    pi = pi * mask
    pi = jnp.clip(pi, EPS, 1.0 - EPS)
    return pi, theta, phi_prob


if __name__ == "__main__":
    # Small, forward-consistent shapes: N individuals, D diseases, T times, K topics.
    N, D, T, K, P = 8, 16, 8, 4, 6

    key = jax.random.PRNGKey(0)
    k_lam, k_phi, k_et = jax.random.split(key, 3)

    # Module uses 0.1 * randn for lambda_ and phi.
    lambda_ = 0.1 * jax.random.normal(k_lam, (N, K, T), dtype=jnp.float32)
    phi = 0.1 * jax.random.normal(k_phi, (K, D, T), dtype=jnp.float32)

    # event_times in [0, T]; value T means "no event / censored" (no masking).
    event_times = jax.random.randint(k_et, (N, D), 0, T + 1, dtype=jnp.int32)

    pi, theta, phi_prob = aladynoulli_forward(lambda_, phi, event_times)
    jax.block_until_ready((pi, theta, phi_prob))

    # Sanity-check against the pure-JAX reference.
    pi_r, theta_r, phi_r = _reference_forward(lambda_, phi, event_times)
    assert jnp.allclose(pi, pi_r, rtol=1e-5, atol=1e-6), "pi mismatch"
    assert jnp.allclose(theta, theta_r, rtol=1e-5, atol=1e-6), "theta mismatch"
    assert jnp.allclose(phi_prob, phi_r, rtol=1e-5, atol=1e-6), "phi_prob mismatch"

    print("KERNEL_OK")
</pallas_src>

<mosaic_0001>
module attributes {stable_mosaic.version = 11 : i64} {
  func.func @_sigmoid_kernel(%arg0: i32, %arg1: memref<4x16x8xf32, #tpu.memory_space<vmem>>, %arg2: memref<4x16x8xf32, #tpu.memory_space<vmem>>) attributes {dimension_semantics = [#tpu.dimension_semantics<parallel>], iteration_bounds = array<i64: 1>, scalar_prefetch = 0 : i64, scratch_operands = 0 : i64, tpu.core_type = #tpu.core_type<tc>, window_params = [{transform_indices = @transform_0, window_bounds = array<i64: 4, 16, 8>}, {transform_indices = @transform_1, window_bounds = array<i64: 4, 16, 8>}]} {
    %c0 = arith.constant 0 : index
    %c0_0 = arith.constant 0 : index
    %c0_1 = arith.constant 0 : index
    %0 = vector.load %arg1[%c0, %c0_0, %c0_1] : memref<4x16x8xf32, #tpu.memory_space<vmem>>, vector<4x16x8xf32>
    %1 = arith.negf %0 : vector<4x16x8xf32>
    %2 = math.exp %1 : vector<4x16x8xf32>
    %cst = arith.constant 1.000000e+00 : f32
    %3 = vector.broadcast %cst : f32 to vector<4x16x8xf32>
    %4 = arith.addf %3, %2 : vector<4x16x8xf32>
    %5 = arith.divf %3, %4 : vector<4x16x8xf32>
    %c0_2 = arith.constant 0 : index
    %c0_3 = arith.constant 0 : index
    %c0_4 = arith.constant 0 : index
    %6 = vector.load %arg2[%c0_2, %c0_3, %c0_4] : memref<4x16x8xf32, #tpu.memory_space<vmem>>, vector<4x16x8xf32>
    tpu.vector_store %arg2[%c0_2, %c0_3, %c0_4], %5 {strides = array<i32>} : memref<4x16x8xf32, #tpu.memory_space<vmem>>, vector<4x16x8xf32>,
    return
  }
  func.func @transform_0(%arg0: i32) -> (i32, i32, i32) {
    %c0_i32 = arith.constant 0 : i32
    %c0_i32_0 = arith.constant 0 : i32
    %c0_i32_1 = arith.constant 0 : i32
    return %c0_i32, %c0_i32_0, %arg0 : i32, i32, i32
  }
  func.func @transform_1(%arg0: i32) -> (i32, i32, i32) {
    %c0_i32 = arith.constant 0 : i32
    %c0_i32_0 = arith.constant 0 : i32
    %c0_i32_1 = arith.constant 0 : i32
    return %c0_i32, %c0_i32_0, %arg0 : i32, i32, i32
  }
}

</mosaic_0001>

<bundles_post_ra>
// kernel: tpu_custom_call.1
= control target key start
LH: loop header
LB: loop body
LE: loop exit
PB: predicated region body
PF: predicated region fallthrough
CT: control target
= control target key end

     0   :  { %vm168_vm3 = vcmask 64512   ;;  %s392_s0 = inlined_call_operand.vmem [shape: f32[4,16,8], index: 0, kind: input, shape index: {}]   ;;  %s393_s1 = inlined_call_operand.vmem [shape: f32[4,16,8], index: 1, kind: output, shape index: {}]  }
   0x1   :  { %v8_v0 = vld [vmem:[%s392_s0] sm:$0xff]  ;;  %v9_v1 = vld [vmem:[%s392_s0 + $0x8] sm:$0xff]  ;;  %v10_v2 = vld [vmem:[%s392_s0 + $0x10] sm:$0xff] }
   0x2   :  { %v181_v3 = vmul.f32 -1.442695, %v8_v0  ;;  %v182_v4 = vmul.f32 -1.442695, %v9_v1  ;;  %v183_v5 = vmul.f32 -1.442695, %v10_v2 }
   0x3   :  { %v11_v6 = vld [vmem:[%s392_s0 + $0x18] sm:$0xff]  ;;  %v12_v7 = vld [vmem:[%s392_s0 + $0x20] sm:$0xff]  ;;  %v13_v8 = vld [vmem:[%s392_s0 + $0x28] sm:$0xff] }
   0x4   :  { %189 = vpow2.f32 %v181_v3  ;;  %v184_v9 = vmul.f32 -1.442695, %v11_v6  ;;  %v185_v10 = vmul.f32 -1.442695, %v12_v7  ;;  %v186_v11 = vmul.f32 -1.442695, %v13_v8 }
   0x5   :  { %191 = vpow2.f32 %v182_v4  ;;  %v14_v12 = vld [vmem:[%s392_s0 + $0x30] sm:$0xff]  ;;  %v15_v13 = vld [vmem:[%s392_s0 + $0x38] sm:$0xff] }
   0x6   :  { %193 = vpow2.f32 %v183_v5  ;;  %v187_v17 = vmul.f32 -1.442695, %v14_v12  ;;  %v188_v20 = vmul.f32 -1.442695, %v15_v13 }
   0x7   :  { %195 = vpow2.f32 %v184_v9 }
   0x8   :  { %197 = vpow2.f32 %v185_v10 }
   0x9   :  { %199 = vpow2.f32 %v186_v11 }
   0xa   :  { %v190_v14 = vpop.eup %189 }
   0xb   :  { %v192_v15 = vpop.eup %191  ;;  %v40_v16 = vadd.f32 1.0, %v190_v14 }
   0xc   :  { %v194_v18 = vpop.eup %193  ;;  %v255_v19 = vadd.f32 1.0, %v192_v15 }
   0xd   :  { %v196_v21 = vpop.eup %195  ;;  %201 = vrcp.f32 %v40_v16  ;;  %v57_v23 = vand.u32 2147483647, %v40_v16  ;;  %v59_v25 = vand.u32 2147483648, %v40_v16  ;;  %v258_v26 = vadd.f32 1.0, %v194_v18 }
   0xe   :  { %v198_v22 = vpop.eup %197  ;;  %203 = vrcp.f32 %v255_v19  ;;  %v260_v27 = vadd.f32 1.0, %v196_v21  ;;  %v72_v28 = vand.u32 2147483647, %v255_v19  ;;  %v74_v29 = vand.u32 2147483648, %v255_v19 }
   0xf   :  { %v200_v24 = vpop.eup %199  ;;  %205 = vpow2.f32 %v187_v17  ;;  %v264_v30 = vadd.f32 1.0, %v198_v22  ;;  %vm53_vm0 = vweird.f32 %v40_v16  ;;  %vm68_vm1 = vweird.f32 %v255_v19 }
  0x10   :  { %207 = vpow2.f32 %v188_v20  ;;  %v89_v31 = vand.u32 2147483648, %v258_v26  ;;  %vm269_vm2 = vcmp.eq.f32.partialorder %v57_v23, 8.507059e+37  ;;  %v87_v33 = vand.u32 2147483647, %v258_v26 }
  0x11   :  { %209 = vrcp.f32 %v258_v26  ;;  %v275_v34 = vadd.f32 1.0, %v200_v24  ;;  %v60_v36 = vor.u32 1.1754944e-38, %v59_v25  ;;  %v102_v37 = vand.u32 2147483647, %v260_v27 }
  0x12   :  { %211 = vrcp.f32 %v260_v27  ;;  %v104_v38 = vand.u32 2147483648, %v260_v27  ;;  %vm280_vm4 = vcmp.eq.f32.partialorder %v72_v28, 8.507059e+37  ;;  %v75_v42 = vor.u32 1.1754944e-38, %v74_v29 }
  0x13   :  { %v202_v35 = vpop.eup %201  ;;  %213 = vrcp.f32 %v264_v30  ;;  %vm83_vm5 = vweird.f32 %v258_v26  ;;  %v90_v45 = vor.u32 1.1754944e-38, %v89_v31  ;;  %vm98_vm6 = vweird.f32 %v260_v27 }
  0x14   :  { %v204_v39 = vpop.eup %203  ;;  %v49_v40 = vmul.f32 %v202_v35, %v40_v16  ;;  %v119_v46 = vand.u32 2147483648, %v264_v30  ;;  %vm54_vm7 = vweird.f32 %v202_v35  ;;  %vm288_vm8 = vcmp.eq.f32.partialorder %v87_v33, 8.507059e+37 }
  0x15   :  { %v206_v43 = vpop.eup %205  ;;  %v64_v44 = vmul.f32 %v204_v39, %v255_v19  ;;  %vm113_vm9 = vweird.f32 %v264_v30  ;;  %215 = vrcp.f32 %v275_v34  ;;  %vm69_vm10 = vweird.f32 %v204_v39  ;;  %vm304_vm13 = vmor %vm53_vm0, %vm54_vm7 }
  0x16   :  { %v208_v47 = vpop.eup %207  ;;  %v50_v48 = vsub.f32 1.0, %v49_v40  ;;  %vm294_vm11 = vcmp.eq.f32.partialorder %v102_v37, 8.507059e+37  ;;  %v105_v53 = vor.u32 1.1754944e-38, %v104_v38  ;;  %v117_v54 = vand.u32 2147483647, %v264_v30  ;;  %vm312_vm15 = vmor %vm68_vm1, %vm69_vm10 }
  0x17   :  { %v210_v50 = vpop.eup %209  ;;  %v65_v51 = vsub.f32 1.0, %v64_v44  ;;  %v132_v58 = vand.u32 2147483647, %v275_v34  ;;  %v120_v63 = vor.u32 1.1754944e-38, %v119_v46  ;;  %v46_v6 = vadd.f32 1.0, %v206_v43 }
  0x18   :  { %v212_v55 = vpop.eup %211  ;;  %v51_v56 = vmul.f32 %v202_v35, %v50_v48  ;;  %v79_v57 = vmul.f32 %v210_v50, %v258_v26  ;;  %vm84_vm14 = vweird.f32 %v210_v50  ;;  %v47_v11 = vadd.f32 1.0, %v208_v47 }
  0x19   :  { %v214_v59 = vpop.eup %213  ;;  %v66_v61 = vmul.f32 %v204_v39, %v65_v51  ;;  %v94_v62 = vmul.f32 %v212_v55, %v260_v27  ;;  %vm99_vm12 = vweird.f32 %v212_v55  ;;  %vm326_vm1 = vmor %vm83_vm5, %vm84_vm14  ;;  %v134_v21 = vand.u32 2147483648, %v275_v34 }
  0x1a   :  { %v52_v0 = vadd.f32 %v202_v35, %v51_v56  ;;  %v80_v2 = vsub.f32 1.0, %v79_v57  ;;  %v109_v3 = vmul.f32 %v214_v59, %v264_v30  ;;  %vm114_vm0 = vweird.f32 %v214_v59 }
  0x1b   :  { %v67_v4 = vadd.f32 %v204_v39, %v66_v61  ;;  %v95_v5 = vsub.f32 1.0, %v94_v62  ;;  %v216_v7 = vpop.eup %215  ;;  %217 = vrcp.f32 %v46_v6  ;;  %vm412_vm7 = vweird.f32 %v275_v34 }
  0x1c   :  { %v56_v8 = vsel %vm304_vm13, %v202_v35, %v52_v0  ;;  %v81_v9 = vmul.f32 %v210_v50, %v80_v2  ;;  %v110_v10 = vsub.f32 1.0, %v109_v3  ;;  %v124_v16 = vmul.f32 %v216_v7, %v275_v34 }
  0x1d   :  { %v61_v12 = vsel %vm269_vm2, %v60_v36, %v56_v8  ;;  %v71_v13 = vsel %vm312_vm15, %v204_v39, %v67_v4  ;;  %v96_v15 = vmul.f32 %v212_v55, %v95_v5  ;;  %vm340_vm2 = vmor %vm98_vm6, %vm99_vm12  ;;  %vm129_vm5 = vweird.f32 %v216_v7 }
  0x1e   :  { %169 = vst.msk [vmem:[%s393_s1] sm:$0xff] %vm168_vm3, %v61_v12  ;;  %v76_v17 = vsel %vm280_vm4, %v75_v42, %v71_v13  ;;  %v82_v18 = vadd.f32 %v210_v50, %v81_v9  ;;  %v111_v20 = vmul.f32 %v214_v59, %v110_v10  ;;  %vm352_vm4 = vmor %vm113_vm9, %vm114_vm0  ;;  %v125_v24 = vsub.f32 1.0, %v124_v16 }
  0x1f   :  { %170 = vst.msk [vmem:[%s393_s1 + $0x8] sm:$0xff] %vm168_vm3, %v76_v17  ;;  %v97_v22 = vadd.f32 %v212_v55, %v96_v15  ;;  %vm118_vm6 = vcmp.eq.f32.partialorder %v117_v54, 8.507059e+37  ;;  %219 = vrcp.f32 %v47_v11  ;;  %vm130_vm9 = vmor %vm412_vm7, %vm129_vm5  ;;  %v135_v32 = vor.u32 1.1754944e-38, %v134_v21 }
  0x20   :  { %v86_v25 = vsel %vm326_vm1, %v210_v50, %v82_v18  ;;  %v112_v26 = vadd.f32 %v214_v59, %v111_v20  ;;  %v126_v29 = vmul.f32 %v216_v7, %v125_v24  ;;  %vm143_vm10 = vweird.f32 %v46_v6 }
  0x21   :  { %v91_v27 = vsel %vm288_vm8, %v90_v45, %v86_v25  ;;  %v101_v28 = vsel %vm340_vm2, %v212_v55, %v97_v22  ;;  %vm133_vm8 = vcmp.eq.f32.partialorder %v132_v58, 8.507059e+37  ;;  %v218_v36 = vpop.eup %217  ;;  %v149_v40 = vand.u32 2147483648, %v46_v6 }
  0x22   :  { %171 = vst.msk [vmem:[%s393_s1 + $0x10] sm:$0xff] %vm168_vm3, %v91_v27  ;;  %v106_v30 = vsel %vm294_vm11, %v105_v53, %v101_v28  ;;  %v116_v31 = vsel %vm352_vm4, %v214_v59, %v112_v26  ;;  %v127_v35 = vadd.f32 %v216_v7, %v126_v29  ;;  %v139_v39 = vmul.f32 %v218_v36, %v46_v6 }
  0x23   :  { %172 = vst.msk [vmem:[%s393_s1 + $0x18] sm:$0xff] %vm168_vm3, %v106_v30  ;;  %v121_v33 = vsel %vm118_vm6, %v120_v63, %v116_v31  ;;  %vm144_vm11 = vweird.f32 %v218_v36  ;;  %v147_v42 = vand.u32 2147483647, %v46_v6  ;;  %vm158_vm12 = vweird.f32 %v47_v11 }
  0x24   :  { %173 = vst.msk [vmem:[%s393_s1 + $0x20] sm:$0xff] %vm168_vm3, %v121_v33  ;;  %v131_v37 = vsel %vm130_vm9, %v216_v7, %v127_v35  ;;  %v140_v41 = vsub.f32 1.0, %v139_v39  ;;  %v164_v44 = vand.u32 2147483648, %v47_v11  ;;  %v162_v47 = vand.u32 2147483647, %v47_v11  ;;  %vm145_vm14 = vmor %vm143_vm10, %vm144_vm11 }
  0x25   :  { %v136_v38 = vsel %vm133_vm8, %v135_v32, %v131_v37  ;;  %v220_v34 = vpop.eup %219  ;;  %v150_v48 = vor.u32 1.1754944e-38, %v149_v40  ;;  %vm148_vm15 = vcmp.eq.f32.partialorder %v147_v42, 8.507059e+37 }
  0x26   :  { %174 = vst.msk [vmem:[%s393_s1 + $0x28] sm:$0xff] %vm168_vm3, %v136_v38  ;;  %v154_v43 = vmul.f32 %v220_v34, %v47_v11  ;;  %v141_v45 = vmul.f32 %v218_v36, %v140_v41  ;;  %vm159_vm13 = vweird.f32 %v220_v34  ;;  %v165_v51 = vor.u32 1.1754944e-38, %v164_v44 }
  0x27   :  { %vm160_vm0 = vmor %vm158_vm12, %vm159_vm13  ;;  %vm163_vm1 = vcmp.eq.f32.partialorder %v162_v47, 8.507059e+37 }
  0x28   :  { %v155_v46 = vsub.f32 1.0, %v154_v43  ;;  %v142_v49 = vadd.f32 %v218_v36, %v141_v45 }
  0x2a   :  { %v156_v50 = vmul.f32 %v220_v34, %v155_v46  ;;  %v146_v52 = vsel %vm145_vm14, %v218_v36, %v142_v49 }
  0x2b   :  { %v151_v54 = vsel %vm148_vm15, %v150_v48, %v146_v52 }
  0x2c   :  { %v157_v53 = vadd.f32 %v220_v34, %v156_v50  ;;  %175 = vst.msk [vmem:[%s393_s1 + $0x30] sm:$0xff] %vm168_vm3, %v151_v54 }
  0x2e   :  { %v161_v55 = vsel %vm160_vm0, %v220_v34, %v157_v53 }
  0x2f   :  { %v166_v56 = vsel %vm163_vm1, %v165_v51, %v161_v55 }
  0x30   :  { %176 = vst.msk [vmem:[%s393_s1 + $0x38] sm:$0xff] %vm168_vm3, %v166_v56 }

</bundles_post_ra>
